<compile_context>
chip_gen: v5e
topology: v5e:2x2
jax: 0.10.0
libtpu: 0.0.40
codegen_flags: <defaults>
</compile_context>

<pallas_src>
import functools

import jax
import jax.numpy as jnp
from jax import lax
from jax.experimental import pallas as pl
from jax.experimental.pallas import tpu as pltpu

IGNORE_INDEX = 255
THRESH = 0.7
# Module default is 10000; use a value <= num_valid at demo size so the OHEM
# (hard-example mining) branch is actually exercised.
MIN_KEPT = 100


def _cdiv(a, b):
    return -(-a // b)


def _round_up(a, m):
    return _cdiv(a, m) * m


# --------------------------------------------------------------------------- #
# Kernel 1: per-pixel softmax prob of the target class + NLL + valid counts.
#   pred block : (c, tile_n)   -- classes on sublanes, pixels on lanes (native NCHW)
#   stats block: (2, tile_n)   -- row 0 = mask_prob (invalid -> 2.0), row 1 = nll
#   count block: (1, 128)      -- lane 0 holds this tile's valid-pixel count
# --------------------------------------------------------------------------- #
def _stats_kernel(pred_ref, tgt_ref, stats_ref, cnt_ref, *, ignore_index):
    logits = pred_ref[...].astype(jnp.float32)                # (C, TN)
    tgt = tgt_ref[...]                                        # (1, TN) int32
    valid = tgt != ignore_index                               # (1, TN) bool
    tgt_c = jnp.where(valid, tgt, 0)                          # target * valid_mask

    # numerically stable log-softmax over the class (sublane) axis
    m = jnp.max(logits, axis=0, keepdims=True)                # (1, TN)
    shifted = logits - m                                      # (C, TN)
    denom = jnp.sum(jnp.exp(shifted), axis=0, keepdims=True)  # (1, TN)

    classes = lax.broadcasted_iota(jnp.int32, logits.shape, 0)
    # select instead of one-hot*mul: one less (C, TN) f32 temporary, fewer VPU ops
    z_true = jnp.sum(jnp.where(classes == tgt_c, shifted, 0.0),
                     axis=0, keepdims=True)                   # (1, TN)

    nll = jnp.log(denom) - z_true                             # -log softmax at target
    p_true = jnp.exp(-nll)                                    # no division
    # Encode invalidity in mask_prob itself (2.0 > any valid prob <= 1.0) so the
    # reduction / top_k never need the target again.
    mp = jnp.where(valid, p_true, 2.0)

    stats_ref[0:1, :] = mp                                    # direct row stores,
    stats_ref[1:2, :] = nll                                   # no sublane concat

    lane = lax.broadcasted_iota(jnp.int32, cnt_ref.shape, 1)
    cnt_ref[...] = jnp.where(lane == 0,
                             jnp.sum(valid.astype(jnp.float32)), 0.0)


def _choose_tile(hw, c, in_bytes, vmem_budget_bytes, lane_cap):
    """Largest lane-tile (multiple of 128) whose VMEM footprint fits the budget.

    Per-lane bytes: pred double buffer (2*c*in_bytes) + target double buffer (8)
    + stats-output double buffer (16) + ~3 live (C, TN) f32 temporaries (12*c).
    The tile is then balanced so padding per image stays small.
    """
    per_lane = 2 * c * in_bytes + 8 + 16 + 3 * c * 4
    cap = (vmem_budget_bytes // per_lane) // 128 * 128
    cap = max(128, min(cap, lane_cap))
    n_tiles = _cdiv(hw, cap)
    return _round_up(_cdiv(hw, n_tiles), 128)


def ohem_ce_loss(pred, target, *, thresh=THRESH, min_kept=MIN_KEPT,
                 ignore_index=IGNORE_INDEX,
                 vmem_budget_bytes=24 << 20, lane_cap=65536):
    b, c, h, w = pred.shape
    hw = h * w
    n = b * hw

    tile_n = _choose_tile(hw, c, pred.dtype.itemsize, vmem_budget_bytes, lane_cap)
    tiles_per_b = _cdiv(hw, tile_n)
    hw_pad = tiles_per_b * tile_n
    n_pad = b * hw_pad
    num_steps = b * tiles_per_b

    # (b, c, h*w) is the native contiguous view of NCHW -> no XLA transpose.
    # Keep pred's dtype (bf16 logits stay bf16 in HBM; kernel upcasts to f32).
    pred_r = pred.reshape(b, c, hw)
    tgt_r = target.reshape(b, hw).astype(jnp.int32)
    if hw_pad != hw:
        pred_r = jnp.pad(pred_r, ((0, 0), (0, 0), (0, hw_pad - hw)))
        tgt_r = jnp.pad(tgt_r, ((0, 0), (0, hw_pad - hw)),
                        constant_values=ignore_index)
    tgt_flat = tgt_r.reshape(1, n_pad)

    # ---- Kernel 1: per-pixel softmax / gather / NLL / valid counts ----------- #
    stats, counts = pl.pallas_call(
        functools.partial(_stats_kernel, ignore_index=ignore_index),
        out_shape=(jax.ShapeDtypeStruct((2, n_pad), jnp.float32),
                   jax.ShapeDtypeStruct((1, num_steps * 128), jnp.float32)),
        grid_spec=pltpu.PrefetchScalarGridSpec(
            num_scalar_prefetch=0,
            grid=(b, tiles_per_b),
            in_specs=[
                pl.BlockSpec((None, c, tile_n), lambda ib, it: (ib, 0, it)),
                pl.BlockSpec((1, tile_n),
                             lambda ib, it: (0, ib * tiles_per_b + it)),
            ],
            out_specs=[
                pl.BlockSpec((2, tile_n),
                             lambda ib, it: (0, ib * tiles_per_b + it)),
                pl.BlockSpec((1, 128),
                             lambda ib, it: (0, ib * tiles_per_b + it)),
            ],
        ),
        compiler_params=pltpu.CompilerParams(
            dimension_semantics=("parallel", "parallel"),
            vmem_limit_bytes=48 * 1024 * 1024),
    )(pred_r, tgt_flat)

    num_valid = jnp.sum(counts)            # no extra pass over `target`
    mp_flat = stats[0]                     # (n_pad,), invalid/padded = 2.0
    nll_flat = stats[1]

    # ---- OHEM threshold (data-dependent selection, XLA glue) ----------------- #
    if min_kept > 0:
        k = min(n, int(min_kept))
        # TODO(synk): at production sizes replace top_k with a histogram-based
        # k-th-smallest (bins accumulated in kernel 1) to avoid the sort cost.
        neg_topk, _ = lax.top_k(-mp_flat, k)
        kth = -neg_topk[k - 1]                                # k-th smallest prob
        thr_ohem = jnp.maximum(kth, jnp.float32(thresh))      # max(kth, thresh) <= 1
        # OHEM only when num_valid >= min_kept (> 0); otherwise keep every valid
        # pixel (threshold 1.0 keeps probs <= 1, excludes invalid encoded as 2.0).
        in_ohem = num_valid >= jnp.float32(min_kept)
        eff_thr = jnp.where(in_ohem, thr_ohem, jnp.float32(1.0))
    else:
        # PyTorch: min_kept == 0 never builds kept_mask -> plain CE over valid.
        eff_thr = jnp.float32(1.0)

    # ---- Masked-mean reduction (fused XLA, HBM-roofline bound) --------------- #
    kept = mp_flat <= eff_thr
    loss_sum = jnp.sum(jnp.where(kept, nll_flat, 0.0))
    kept_cnt = jnp.sum(kept.astype(jnp.float32))
    # All-ignored input -> NaN (0/0), matching torch's mean over zero elements.
    return loss_sum / kept_cnt


if __name__ == "__main__":
    key = jax.random.PRNGKey(0)
    k1, k2, k3 = jax.random.split(key, 3)

    b, c, h, w = 2, 4, 16, 16
    pred = jax.random.normal(k1, (b, c, h, w), dtype=jnp.float32)
    labels = jax.random.randint(k2, (b, h, w), 0, c, dtype=jnp.int32)
    drop = jax.random.uniform(k3, (b, h, w)) < 0.1
    target = jnp.where(drop, IGNORE_INDEX, labels).astype(jnp.int32)

    loss = ohem_ce_loss(pred, target)
    jax.block_until_ready(loss)
    print("KERNEL_OK")
</pallas_src>

<mosaic_0001>
module attributes {stable_mosaic.version = 11 : i64} {
  func.func @_stats_kernel(%arg0: i32, %arg1: i32, %arg2: memref<1x4x256xf32, #tpu.memory_space<vmem>>, %arg3: memref<1x256xi32, #tpu.memory_space<vmem>>, %arg4: memref<2x256xf32, #tpu.memory_space<vmem>>, %arg5: memref<1x128xf32, #tpu.memory_space<vmem>>) attributes {dimension_semantics = [#tpu.dimension_semantics<parallel>, #tpu.dimension_semantics<parallel>], iteration_bounds = array<i64: 2, 1>, scalar_prefetch = 0 : i64, scratch_operands = 0 : i64, tpu.core_type = #tpu.core_type<tc>, window_params = [{transform_indices = @transform_0, window_bounds = array<i64: 1, 4, 256>}, {transform_indices = @transform_1, window_bounds = array<i64: 1, 256>}, {transform_indices = @transform_2, window_bounds = array<i64: 2, 256>}, {transform_indices = @transform_3, window_bounds = array<i64: 1, 128>}]} {
    %c0 = arith.constant 0 : index
    %c0_0 = arith.constant 0 : index
    %c0_1 = arith.constant 0 : index
    %0 = vector.load %arg2[%c0, %c0_0, %c0_1] : memref<1x4x256xf32, #tpu.memory_space<vmem>>, vector<1x4x256xf32>
    %1 = vector.shape_cast %0 : vector<1x4x256xf32> to vector<4x256xf32>
    %c0_2 = arith.constant 0 : index
    %c0_3 = arith.constant 0 : index
    %2 = vector.load %arg3[%c0_2, %c0_3] : memref<1x256xi32, #tpu.memory_space<vmem>>, vector<1x256xi32>
    %c255_i32 = arith.constant 255 : i32
    %3 = vector.broadcast %c255_i32 : i32 to vector<1x256xi32>
    %4 = arith.cmpi ne, %2, %3 : vector<1x256xi32>
    %c0_i32 = arith.constant 0 : i32
    %5 = vector.broadcast %c0_i32 : i32 to vector<1x256xi32>
    %6 = arith.select %4, %2, %5 : vector<1x256xi1>, vector<1x256xi32>
    %cst = arith.constant dense<0xFF800000> : vector<256xf32>
    %7 = vector.multi_reduction <maximumf>, %1, %cst [0] : vector<4x256xf32> to vector<256xf32>
    %8 = vector.shape_cast %7 : vector<256xf32> to vector<1x256xf32>
    %9 = vector.broadcast %8 : vector<1x256xf32> to vector<4x256xf32>
    %10 = arith.subf %1, %9 : vector<4x256xf32>
    %11 = math.exp %10 : vector<4x256xf32>
    %cst_4 = arith.constant dense<0.000000e+00> : vector<256xf32>
    %12 = vector.multi_reduction <add>, %11, %cst_4 [0] : vector<4x256xf32> to vector<256xf32>
    %13 = vector.shape_cast %12 : vector<256xf32> to vector<1x256xf32>
    %14 = tpu.iota {dimensions = array<i32: 0>} : vector<4x256xi32>
    %15 = vector.broadcast %6 : vector<1x256xi32> to vector<4x256xi32>
    %16 = arith.cmpi eq, %14, %15 : vector<4x256xi32>
    %cst_5 = arith.constant 0.000000e+00 : f32
    %17 = vector.broadcast %cst_5 : f32 to vector<4x256xf32>
    %18 = arith.select %16, %10, %17 : vector<4x256xi1>, vector<4x256xf32>
    %cst_6 = arith.constant dense<0.000000e+00> : vector<256xf32>
    %19 = vector.multi_reduction <add>, %18, %cst_6 [0] : vector<4x256xf32> to vector<256xf32>
    %20 = vector.shape_cast %19 : vector<256xf32> to vector<1x256xf32>
    %21 = math.log %13 : vector<1x256xf32>
    %22 = arith.subf %21, %20 : vector<1x256xf32>
    %cst_7 = arith.constant 0.000000e+00 : f32
    %23 = vector.broadcast %cst_7 : f32 to vector<1x256xf32>
    %24 = arith.subf %23, %22 : vector<1x256xf32>
    %25 = math.exp %24 : vector<1x256xf32>
    %cst_8 = arith.constant 2.000000e+00 : f32
    %26 = vector.broadcast %cst_8 : f32 to vector<1x256xf32>
    %27 = arith.select %4, %25, %26 : vector<1x256xi1>, vector<1x256xf32>
    %c0_9 = arith.constant 0 : index
    %c0_10 = arith.constant 0 : index
    %28 = vector.load %arg4[%c0_9, %c0_10] : memref<2x256xf32, #tpu.memory_space<vmem>>, vector<1x256xf32>
    tpu.vector_store %arg4[%c0_9, %c0_10], %27 {strides = array<i32>} : memref<2x256xf32, #tpu.memory_space<vmem>>, vector<1x256xf32>,
    %c1 = arith.constant 1 : index
    %c0_11 = arith.constant 0 : index
    %29 = vector.load %arg4[%c1, %c0_11] : memref<2x256xf32, #tpu.memory_space<vmem>>, vector<1x256xf32>
    tpu.vector_store %arg4[%c1, %c0_11], %22 {strides = array<i32>} : memref<2x256xf32, #tpu.memory_space<vmem>>, vector<1x256xf32>,
    %30 = tpu.iota {dimensions = array<i32: 1>} : vector<1x128xi32>
    %c0_i32_12 = arith.constant 0 : i32
    %31 = vector.broadcast %c0_i32_12 : i32 to vector<1x128xi32>
    %32 = arith.cmpi eq, %30, %31 : vector<1x128xi32>
    %33 = arith.extui %4 : vector<1x256xi1> to vector<1x256xi32>
    %34 = arith.sitofp %33 : vector<1x256xi32> to vector<1x256xf32>
    %35 = vector.shape_cast %34 : vector<1x256xf32> to vector<1x1x256xf32>
    %cst_13 = arith.constant dense<0.000000e+00> : vector<1xf32>
    %36 = vector.multi_reduction <add>, %35, %cst_13 [1, 2] : vector<1x1x256xf32> to vector<1xf32>
    %37 = vector.shape_cast %36 : vector<1xf32> to vector<1x1x1xf32>
    %38 = vector.extract %37[0, 0, 0] : f32 from vector<1x1x1xf32>
    %cst_14 = arith.constant 0.000000e+00 : f32
    %39 = vector.broadcast %38 : f32 to vector<1x128xf32>
    %40 = vector.broadcast %cst_14 : f32 to vector<1x128xf32>
    %41 = arith.select %32, %39, %40 : vector<1x128xi1>, vector<1x128xf32>
    %c0_15 = arith.constant 0 : index
    %c0_16 = arith.constant 0 : index
    %42 = vector.load %arg5[%c0_15, %c0_16] : memref<1x128xf32, #tpu.memory_space<vmem>>, vector<1x128xf32>
    tpu.vector_store %arg5[%c0_15, %c0_16], %41 {strides = array<i32>} : memref<1x128xf32, #tpu.memory_space<vmem>>, vector<1x128xf32>,
    return
  }
  func.func @transform_0(%arg0: i32, %arg1: i32) -> (i32, i32, i32) {
    %c0_i32 = arith.constant 0 : i32
    %c0_i32_0 = arith.constant 0 : i32
    return %arg0, %c0_i32, %arg1 : i32, i32, i32
  }
  func.func @transform_1(%arg0: i32, %arg1: i32) -> (i32, i32) {
    %c1_i32 = arith.constant 1 : i32
    %0 = arith.muli %arg0, %c1_i32 : i32
    %1 = arith.addi %0, %arg1 : i32
    %c0_i32 = arith.constant 0 : i32
    %c0_i32_0 = arith.constant 0 : i32
    return %c0_i32, %1 : i32, i32
  }
  func.func @transform_2(%arg0: i32, %arg1: i32) -> (i32, i32) {
    %c1_i32 = arith.constant 1 : i32
    %0 = arith.muli %arg0, %c1_i32 : i32
    %1 = arith.addi %0, %arg1 : i32
    %c0_i32 = arith.constant 0 : i32
    %c0_i32_0 = arith.constant 0 : i32
    return %c0_i32, %1 : i32, i32
  }
  func.func @transform_3(%arg0: i32, %arg1: i32) -> (i32, i32) {
    %c1_i32 = arith.constant 1 : i32
    %0 = arith.muli %arg0, %c1_i32 : i32
    %1 = arith.addi %0, %arg1 : i32
    %c0_i32 = arith.constant 0 : i32
    %c0_i32_0 = arith.constant 0 : i32
    return %c0_i32, %1 : i32, i32
  }
}

</mosaic_0001>

<bundles_post_ra>
// kernel: tpu_custom_call.1
= control target key start
LH: loop header
LB: loop body
LE: loop exit
PB: predicated region body
PF: predicated region fallthrough
CT: control target
= control target key end

     0   :  { %9 = vsyncpa [#allocation3], 0  ;;  %s1062_s0 = inlined_call_operand.hbm [shape: f32[2,4,256], index: 0, kind: input, shape index: {}]   ;;  %s1063_s1 = inlined_call_operand.hbm [shape: s32[1,512], index: 1, kind: input, shape index: {}]   ;;  %s1064_s2 = inlined_call_operand.hbm [shape: f32[2,512], index: 2, kind: output, shape index: {0}]   ;;  %s1065_s3 = inlined_call_operand.hbm [shape: f32[1,256], index: 3, kind: output, shape index: {1}]  }
   0x1   :  { %11 = vsyncpa [#allocation3 + $0x1], 0 }
   0x2   :  { %12 = vsyncpa [#allocation6], 0 }
   0x3   :  { %14 = vsyncpa [#allocation6 + $0x1], 0 }
   0x4   :  { %15 = vsyncpa [#allocation4], 0 }
   0x5   :  { %17 = vsyncpa [#allocation4 + $0x1], 0 }
   0x6   :  { %18 = vsyncpa [#allocation9], 0 }
   0x7   :  { %20 = vsyncpa [#allocation9 + $0x1], 0  ;;  %s883_s12 = smov 0   ;;  %s885_s13 = smov 0  }
   0x8   :  { %s887_s14 = smov 0   ;;  %s889_s15 = smov 0  }
   0x9   :  { %s891_s16 = smov 0   ;;  %s893_s17 = smov 0  }
   0xa LB: > { %s575_s18 = sadd.s32 4294967295, %s860_s17   ;;  %s576_s19 = sadd.s32 4294967294, %s860_s17   ;;  %s860_s17 = sphi %s893_s17, %s26_s17   ;;  %s856_s16 = sphi %s891_s16, %s1075_s16   ;;  %s852_s15 = sphi %s889_s15, %s1074_s15   ;;  %s848_s14 = sphi %s887_s14, %s1073_s14   ;;  %s844_s13 = sphi %s885_s13, %s1072_s13   ;;  %s840_s12 = sphi %s883_s12, %s1071_s12  }
   0xb   : > { %s38_s20 = sadd.s32 1, %s856_s16  ;;  %s47_s21 = sadd.s32 1, %s848_s14 }
   0xc   : > { %p40_p0 = scmp.ge.s32.totalorder %s38_s20, 2  ;;  %p54_p1 = scmp.ne.s32.totalorder %s848_s14, %s844_s13 }
   0xd   : > { %p55_p2 = scmp.eq.s32.totalorder %s860_s17, 0  ;;  %p60_p3 = scmp.ne.s32.totalorder %s844_s13, %s840_s12 }
   0xe   : > { %s1077_s20 = smov (%p40_p0, %s38_s20), 0  ;;  %p61_p5 = scmp.eq.s32.totalorder %s575_s18, 0 }
   0xf   : > { %p924_p4 = por %p55_p2, %p54_p1  ;;  %s42_s23 = ssub.s32 %s856_s16, %s1077_s20 }
  0x10   : > { %p114_p6 = scmp.eq.s32.totalorder %s575_s18, 1  ;;  %p45_p7 = scmp.eq.s32.totalorder %s42_s23, 0 }
  0x11   : > { %p930_p8 = por %p61_p5, %p60_p3  ;;  %p120_p10 = scmp.eq.s32.totalorder %s576_s19, 1 }
  0x12   : > { %p934_p9 = por %p114_p6, %p54_p1  ;;  %p578_p12 = scmp.ge.s32.totalorder %s860_s17, 2 }
  0x13   : > { %s939_s26 = scalar_select %p45_p7, %s848_s14, %s47_s21  }
  0x14   : > { %p941_p11 = por %p120_p10, %p60_p3  ;;  %p621_p13 = scmp.lt.s32.totalorder %s860_s17, 2 }
  0x15   : > { %s168_s28 = sand.u32 1, %s848_s14   ;;  %s595_s30 = sshll.u32 %s856_s16, 3 }
  0x16   : > { %s579_s29 = sshll.u32 %s168_s28, 3  ;;  %s179_s6 = scalar_lea.hbm %s1062_s0, %s595_s30 }
  0x17   : > { %s172_s7 = scalar_lea.vmem [#allocation2], %s579_s29  ;;  %s181_s9 = sshll.u32 %s179_s6, 4  ;;  %s182_s9 = int_to_ptr.hbm [resolvable:$true] %s181_s9 }
  0x18   : > { %s183_s8 = sshll.u32 %s172_s7, 4  ;;  %p954_p0 = pnand %p621_p13, %p924_p4  ;;  %s184_s8 = int_to_ptr.vmem [resolvable:$true] %s183_s8 }
  0x19   : > { %p584_p1 = scmp.ge.s32.totalorder %s860_s17, 1  ;;  %p208_p2 = scmp.lt.s32.totalorder %s860_s17, 3 }
  0x1a   : > { %s169_s11 = scalar_lea.sflag [#allocation3], %s168_s28  ;;  %s582_s18 = sshll.u32 %s168_s28, 1 }
  0x1b   : > { %610 = dma.hbm_to_vmem [thread:$0]  (!%p954_p0), %s182_s9, 128, %s184_s8, %s169_s11  }
  0x1c   : > { %p209_p3 = pnand %p584_p1, %p208_p2  ;;  %s583_s19 = sshll.u32 %s856_s16, 1 }
  0x1d   : > { %s199_s29 = scalar_lea.hbm %s1063_s1, %s583_s19  ;;  %s194_s30 = scalar_lea.vmem [#allocation5], %s582_s18 }
  0x1e   : > { %s203_s22 = sshll.u32 %s194_s30, 4  ;;  %s201_s4 = sshll.u32 %s199_s29, 4  ;;  %s204_s22 = int_to_ptr.vmem [resolvable:$true] %s203_s22  ;;  %s202_s4 = int_to_ptr.hbm [resolvable:$true] %s201_s4 }
  0x1f   : > { %s191_s5 = scalar_lea.sflag [#allocation6], %s168_s28  ;;  %212 = sbr.rel (%p209_p3) target bundleno = 231 (0xe7), region = 28 }
  0x20   : > { %613 = dma.hbm_to_vmem [thread:$0]  (!%p954_p0), %s202_s4, 32, %s204_s22, %s191_s5  }
  0x21   : > { %s969_s6 = sand.u32 (!%p209_p3), 1, %s844_s13  }
  0x22   : > { %s585_s7 = sshll.u32 (!%p209_p3), %s969_s6, 3  ;;  %s215_s8 = scalar_lea.sflag (!%p209_p3), [#allocation3], %s969_s6 }
  0x23   : > { %s218_s9 = scalar_lea.vmem (!%p209_p3), [#allocation2], %s585_s7 }
  0x24   : > { %823 = dma.done.wait (%p930_p8), %s215_s8, 128  }
  0x25   : > { %825 = vsyncadd (%p930_p8), %s215_s8, 4294967168  ;;  %s586_s28 = sshll.u32 %s969_s6, 1  ;;  %s225_s10 = scalar_lea.sflag [#allocation6], %s969_s6 }
  0x26   : > { %s228_s11 = scalar_lea.vmem [#allocation5], %s586_s28 }
  0x27   : > { %827 = dma.done.wait (%p930_p8), %s225_s10, 32  }
  0x28   : > { %829 = vsyncadd (%p930_p8), %s225_s10, 4294967264  ;;  %v983_v0 = vld [vmem:[%s228_s11] sm:$0x3]  ;;  %vm363_vm1 = vcmask 1040384   ;;  %v862_v1 = vmov 0.0   ;;  %v267_v8 = vld [vmem:[%s218_s9] sm:$0xff]  ;;  %v320_v31 = vlaneseq }
  0x29   : > { %vm269_vm0 = vcmp.ne.s32.totalorder %v983_v0, 255  ;;  %272 = vst [vmem:[#allocation1] ss:$2 sm:$0xff] %v267_v8  ;;  %vm277_vm2 = vcmask 1043456   ;;  %s587_s24 = sshll.u32 %s969_s6, 2  ;;  %s596_s18 = sshll.u32 %s852_s15, 2 }
  0x2a   : > { %v589_v2 = vsel %vm269_vm0, 1.0, %v862_v1  ;;  %v270_v30 = vsel %vm269_vm0, %v983_v0, 0  ;;  %v321_v38 = vshrl.u32 %v320_v31, 7  ;;  %s421_s23 = scalar_lea.hbm %s1064_s2, %s596_s18  ;;  %s254_s29 = scalar_lea.vmem [#allocation7], %s587_s24  ;;  %vm369_vm5 = vcmp.lt.s32.totalorder %v320_v31, 256 }
  0x2b   : > { %v385_v3 = vperm.slane %v589_v2, 0  ;;  %v386_v4 = vperm.slane %v589_v2, 1  ;;  %v322_v35 = vperm.slane %v270_v30, 0  ;;  %v323_v37 = vperm.slane %v270_v30, 1  ;;  %s423_s30 = sshll.u32 %s254_s29, 4  ;;  %s425_s22 = sshll.u32 %s421_s23, 4  ;;  %s424_s30 = int_to_ptr.vmem [resolvable:$true] %s423_s30  ;;  %s426_s22 = int_to_ptr.hbm [resolvable:$true] %s425_s22 }
  0x2c   : > { %s405_s4 = scalar_lea.sflag [#allocation4], %s969_s6  ;;  %s756_s5 = sshra.s32 %s426_s22, 4  ;;  %s757_s5 = int_to_ptr.hbm [resolvable:$true] %s756_s5 }
  0x2d   : > { %v389_v5 = vsel %vm363_vm1, %v385_v3, 0.0  ;;  %v390_v6 = vsel %vm363_vm1, %v386_v4, 0.0  ;;  %vm324_vm3 = vcmp.eq.s32.totalorder %v321_v38, %v322_v35  ;;  %vm325_vm4 = vcmp.eq.s32.totalorder %v321_v38, %v323_v37  ;;  %s758_s7 = scalar_lea.hbm %s757_s5, 4  ;;  %s762_s28 = scalar_lea.hbm %s1064_s2, 8 }
  0x2e   : > { %v391_v7 = vadd.f32 %v390_v6, %v389_v5  ;;  %p759_p4 = scmp.ne.s32.totalorder %s757_s5, %s758_s7  ;;  %p763_p7 = scmp.lt.s32.totalorder %s757_s5, %s1064_s2 }
  0x2f   : > { %p764_p8 = scmp.lt.s32.totalorder %s762_s28, %s758_s7 }
  0x30   : > { %392 = vadd.xlane.f32.xlu0 %v391_v7  ;;  %v274_v9 = vld.sshfl [vmem:[#allocation1 + $0x8] sm:$0xff pattern:$0x75316420]  ;;  %v273_v11 = vld.sshfl [vmem:[#allocation1] sm:$0xff pattern:$0x75316420]  ;;  %p760_p5 = pnand %p759_p4, %p934_p9 }
  0x31   : > { %v285_v10 = vsel %vm277_vm2, %v274_v9, -inf  ;;  %v278_v13 = vsel %vm277_vm2, %v273_v11, -inf  ;;  %p765_p10 = por %p764_p8, %p763_p7 }
  0x32   : > { %v286_v12 = vrot.slane %v285_v10, 4  ;;  %v279_v14 = vrot.slane %v278_v13, 4  ;;  %p761_p6 = pneg %p760_p5 }
  0x34   : > { %v287_v15 = vmax.f32 %v285_v10, %v286_v12  ;;  %v280_v16 = vmax.f32 %v278_v13, %v279_v14  ;;  %p766_p13 = pnand %p765_p10, %p761_p6 }
  0x36   : > { %v288_v17 = vrot.slane %v287_v15, 2  ;;  %v281_v18 = vrot.slane %v280_v16, 2 }
  0x38   : > { %v289_v19 = vmax.f32 %v287_v15, %v288_v17  ;;  %v282_v20 = vmax.f32 %v280_v16, %v281_v18 }
  0x3a   : > { %v290_v21 = vrot.slane %v289_v19, 1  ;;  %v283_v22 = vrot.slane %v282_v20, 1 }
  0x3c   : > { %v291_v23 = vmax.f32 %v289_v19, %v290_v21  ;;  %v284_v24 = vmax.f32 %v282_v20, %v283_v22 }
  0x3e   : > { %v294_v25 = vrot.slane %v291_v23, 4 }
  0x40   : > { %v295_v26 = vsel %vm277_vm2, %v284_v24, %v294_v25 }
  0x41   : > { %v297_v27 = vsub.f32 %v267_v8, %v295_v26 }
  0x43   : > { %v298_v28 = vmul.f32 1.442695, %v297_v27 }
  0x45   : > { %672 = vpow2.f32 %v298_v28 }
  0x4b   : > { %v673_v29 = vpop.eup %672 }
  0x4c   : > { %301 = vst [vmem:[#allocation1] ss:$2 sm:$0xff] %v673_v29 }
  0x53   : > { %v302_v32 = vld.sshfl [vmem:[#allocation1] sm:$0xff pattern:$0x75316420]  ;;  %v303_v33 = vld.sshfl [vmem:[#allocation1 + $0x8] sm:$0xff pattern:$0x75316420] }
  0x54   : > { %327 = vst [vmem:[#allocation1] ss:$2 sm:$0xff] %v297_v27  ;;  %v313_v34 = vsel %vm277_vm2, %v303_v33, 0.0  ;;  %v306_v39 = vsel %vm277_vm2, %v302_v32, 0.0 }
  0x55   : > { %v314_v36 = vrot.slane %v313_v34, 4  ;;  %v307_v40 = vrot.slane %v306_v39, 4 }
  0x57   : > { %v315_v41 = vadd.f32 %v314_v36, %v313_v34  ;;  %v308_v42 = vadd.f32 %v307_v40, %v306_v39 }
  0x59   : > { %v316_v43 = vrot.slane %v315_v41, 2  ;;  %v309_v47 = vrot.slane %v308_v42, 2 }
  0x5b   : > { %v328_v46 = vld.sshfl [vmem:[#allocation1] sm:$0xff pattern:$0x75316420]  ;;  %v317_v48 = vadd.f32 %v316_v43, %v315_v41  ;;  %v329_v49 = vld.sshfl [vmem:[#allocation1 + $0x8] sm:$0xff pattern:$0x75316420]  ;;  %v310_v54 = vadd.f32 %v309_v47, %v308_v42 }
  0x5c   : > { %v332_v50 = vsel %vm324_vm3, %v328_v46, 0.0  ;;  %v333_v52 = vsel %vm325_vm4, %v329_v49, 0.0 }
  0x5d   : > { %v334_v53 = vsel %vm277_vm2, %v332_v50, 0.0  ;;  %v341_v56 = vsel %vm277_vm2, %v333_v52, 0.0  ;;  %v318_v57 = vrot.slane %v317_v48, 1  ;;  %v311_v60 = vrot.slane %v310_v54, 1 }
  0x5e   : > { %v335_v55 = vrot.slane %v334_v53, 4  ;;  %v342_v59 = vrot.slane %v341_v56, 4 }
  0x5f   : > { %v319_v62 = vadd.f32 %v318_v57, %v317_v48  ;;  %v312_v2 = vadd.f32 %v311_v60, %v310_v54 }
  0x60   : > { %v336_v61 = vadd.f32 %v335_v55, %v334_v53  ;;  %v343_v1 = vadd.f32 %v342_v59, %v341_v56 }
  0x61   : > { %674 = vlog2.f32 %v319_v62 }
  0x62   : > { %v337_v3 = vrot.slane %v336_v61, 2  ;;  %v344_v5 = vrot.slane %v343_v1, 2  ;;  %676 = vlog2.f32 %v312_v2 }
  0x64   : > { %v338_v6 = vadd.f32 %v337_v3, %v336_v61  ;;  %v345_v8 = vadd.f32 %v344_v5, %v343_v1 }
  0x66   : > { %v339_v9 = vrot.slane %v338_v6, 1  ;;  %v346_v10 = vrot.slane %v345_v8, 1 }
  0x67   : > { %v675_v11 = vpop.eup %674 }
  0x68   : > { %v677_v12 = vpop.eup %676  ;;  %v347_v13 = vadd.f32 %v346_v10, %v345_v8  ;;  %v351_v14 = vmul.f32 0.6931472, %v675_v11  ;;  %v340_v15 = vadd.f32 %v339_v9, %v338_v6 }
  0x69   : > { %v349_v16 = vmul.f32 0.6931472, %v677_v12 }
  0x6a   : > { %v353_v17 = vsub.f32 %v351_v14, %v347_v13 }
  0x6b   : > { %v352_v18 = vsub.f32 %v349_v16, %v340_v15 }
  0x6c   : > { %v355_v19 = vsub.f32 0.0, %v353_v17  ;;  %v374_v26 = vrot.slane %v353_v17, 7 }
  0x6d   : > { %v354_v20 = vsub.f32 0.0, %v352_v18 }
  0x6e   : > { %v358_v21 = vmul.f32 1.442695, %v355_v19  ;;  %v375_v28 = vsel %vm363_vm1, %v352_v18, %v374_v26 }
  0x6f   : > { %v356_v22 = vmul.f32 1.442695, %v354_v20  ;;  %588 = vst.msk [vmem:[%s254_s29 + $0x1] ss:$2 sm:$0x3] %vm369_vm5, %v375_v28 }
  0x70   : > { %678 = vpow2.f32 %v358_v21 }
  0x71   : > { %680 = vpow2.f32 %v356_v22 }
  0x76   : > { %v679_v23 = vpop.eup %678 }
  0x77   : > { %v681_v24 = vpop.eup %680  ;;  %v362_v25 = vrot.slane %v679_v23, 7 }
  0x79   : > { %v364_v27 = vsel %vm363_vm1, %v681_v24, %v362_v25 }
  0x7a   : > { %v366_v29 = vsel %vm269_vm0, %v364_v27, 2.0 }
  0x7b   : > { %371 = vst.msk [vmem:[%s254_s29] ss:$2 sm:$0x3] %vm369_vm5, %v366_v29 }
  0xa3   : > { %v393_v44 = vpop.xlane.xlu0 %392 }
  0xa4   : > { %v394_v45 = vrot.slane %v393_v44, 4 }
  0xa6   : > { %v395_v51 = vadd.f32 %v394_v45, %v393_v44 }
  0xa8   : > { %v396_v58 = vrot.slane %v395_v51, 2 }
  0xaa   : > { %v397_v63 = vadd.f32 %v396_v58, %v395_v51 }
  0xac   : > { %v398_v4 = vrot.slane %v397_v63, 1 }
  0xae   : > { %v399_v7 = vadd.f32 %v398_v4, %v397_v63 }
  0xb0   : > { %597 = vpush %v399_v7 }
  0xb1   : > { %769 = shalt.err (!%p766_p13)
}
  0xb2   : > { %603 = dma.vmem_to_hbm [thread:$0]  (%p934_p9), %s424_s30, 64, %s426_s22, %s405_s4   ;;  %v380_v0 = vand.u32 127, %v320_v31 }
  0xb3   : > { %s435_s19 = scalar_lea.hbm %s1065_s3, %s852_s15  ;;  %s260_s21 = scalar_lea.vmem [#allocation8], %s969_s6 }
  0xb4   : > { %s437_s23 = sshll.u32 %s260_s21, 4  ;;  %s439_s29 = sshll.u32 %s435_s19, 4  ;;  %vm381_vm6 = vcmp.eq.s32.totalorder %v380_v0, 0  ;;  %s438_s23 = int_to_ptr.vmem [resolvable:$true] %s437_s23  ;;  %s440_s29 = int_to_ptr.hbm [resolvable:$true] %s439_s29 }
  0xb5   : > { %s410_s7 = scalar_lea.sflag [#allocation9], %s969_s6  ;;  %s784_s8 = sshra.s32 %s440_s29, 4  ;;  %s785_s8 = int_to_ptr.hbm [resolvable:$true] %s784_s8 }
  0xb6   : > { %s786_s30 = scalar_lea.hbm %s785_s8, 1  ;;  %s790_s4 = scalar_lea.hbm %s1065_s3, 2 }
  0xb7   : > { %p787_p0 = scmp.ne.s32.totalorder %s785_s8, %s786_s30  ;;  %p791_p3 = scmp.lt.s32.totalorder %s785_s8, %s1065_s3 }
  0xb8   : > { %p792_p4 = scmp.lt.s32.totalorder %s790_s4, %s786_s30 }
  0xb9   : > { %p788_p1 = pnand %p787_p0, %p934_p9 }
  0xba   : > { %p793_p5 = por %p792_p4, %p791_p3 }
  0xbb   : > { %p789_p2 = pneg %p788_p1 }
  0xbd   : > { %p794_p6 = pnand %p793_p5, %p789_p2 }
  0xe1   : > { %s598_s5 = spop %597 }
  0xe2   : > { %v401_v30 = vstv %s598_s5 }
  0xe3   : > { %v402_v32 = vsel %vm381_vm6, %v401_v30, 0.0 }
  0xe4   : > { %403 = vst [vmem:[%s260_s21] sm:$0x1] %v402_v32 }
  0xe5   : > { %797 = shalt.err (!%p794_p6)
}
  0xe6   : > { %604 = dma.vmem_to_hbm [thread:$0]  (%p934_p9), %s438_s23, 16, %s440_s29, %s410_s7  }
  0xe7 PF: > { %s451_s6 = sand.u32 1, %s840_s12   ;;  %p615_p7 = pnand %p578_p12, %p941_p11 }
  0xe8   : > { %s452_s10 = scalar_lea.sflag [#allocation4], %s451_s6 }
  0xe9   : > { %p616_p8 = pneg %p615_p7 }
  0xeb   : > { %831 = dma.done.wait (%p616_p8), %s452_s10, 64  }
  0xec   : > { %833 = vsyncadd (%p616_p8), %s452_s10, 4294967232  ;;  %s462_s11 = scalar_lea.sflag [#allocation9], %s451_s6 }
  0xed   : > { %835 = dma.done.wait (%p616_p8), %s462_s11, 16  }
  0xee   : > { %837 = vsyncadd (%p616_p8), %s462_s11, 4294967280  ;;  %s26_s17 = sadd.s32 1, %s860_s17   ;;  %s1071_s12 = smov %s844_s13 }
  0xef   : > { %p23_p10 = scmp.ge.s32.totalorder %s26_s17, 4   ;;  %s1072_s13 = smov %s848_s14 }
  0xf0   : > { %s1073_s14 = smov %s939_s26  ;;  %s1074_s15 = smov %s856_s16 }
  0xf1   : > { %s1075_s16 = smov %s1077_s20  ;;  %25 = sbr.rel (!%p23_p10) target bundleno = 10 (0xa), region = 104 }
  0xf6   :  { %467 = vsyncpa [#allocation3], 1 }
  0xf7   :  { %469 = vsyncpa [#allocation3 + $0x1], 1 }
  0xf8   :  { %470 = vsyncpa [#allocation6], 1 }
  0xf9   :  { %472 = vsyncpa [#allocation6 + $0x1], 1 }
  0xfa   :  { %473 = vsyncpa [#allocation4], 1 }
  0xfb   :  { %475 = vsyncpa [#allocation4 + $0x1], 1 }
  0xfc   :  { %476 = vsyncpa [#allocation9], 1 }
  0xfd   :  { %478 = vsyncpa [#allocation9 + $0x1], 1 }

</bundles_post_ra>
